<compile_context>
chip_gen: v7x
topology: tpu7x:2x2x1
jax: 0.10.0
libtpu: 0.0.40
codegen_flags: <defaults>
</compile_context>

<pallas_src>
import functools

import jax
import jax.numpy as jnp
from jax.experimental import pallas as pl
from jax.experimental.pallas import tpu as pltpu

LANE = 128
SUBLANE = 8


def _round_up(x, m):
    return ((x + m - 1) // m) * m


# ----------------------------------------------------------------------------
# Pallas kernel: fused row-gather + 3-layer MLP
#   x1 = relu(z[idx] @ W1[:dz] + enc[idx] @ W1[dz:] + b1)
#   x2 = relu(x1 @ W2 + b2)
#   o  = x2 @ W3p + b3p              (W3p/b3p zero-padded to 128 classes)
# ----------------------------------------------------------------------------
def _pos_decoder_kernel(idx_ref, *refs, skip, dz, dx, tile_m, compute_dtype):
    if skip:
        (z_ref, x_ref, w1_ref, b1_ref, w2_ref, b2_ref, w3_ref, b3_ref,
         o_ref, hz_ref, hx_ref) = refs
    else:
        (z_ref, w1_ref, b1_ref, w2_ref, b2_ref, w3_ref, b3_ref,
         o_ref, hz_ref) = refs
        x_ref = hx_ref = None

    base = pl.program_id(0) * tile_m

    # Fused row gather: copy this tile's rows of z (and encoded) into VMEM
    # scratch using the prefetched index table in SMEM.
    @pl.loop(0, tile_m)
    def _(r):
        row = idx_ref[base + r]
        hz_ref[pl.ds(r, 1), :] = z_ref[pl.ds(row, 1), :]
        if skip:
            hx_ref[pl.ds(r, 1), :] = x_ref[pl.ds(row, 1), :]

    cd = compute_dtype
    hz = hz_ref[...].astype(cd)

    # Layer 1 -- split-weight matmul replaces the concat((hz, hx)) entirely.
    x1 = jnp.dot(hz, w1_ref[0:dz, :].astype(cd),
                 preferred_element_type=jnp.float32)
    if skip:
        hx = hx_ref[...].astype(cd)
        x1 = x1 + jnp.dot(hx, w1_ref[dz:dz + dx, :].astype(cd),
                          preferred_element_type=jnp.float32)
    x1 = jnp.maximum(x1 + b1_ref[...], 0.0)          # ReLU (Dropout == id)

    # Layer 2
    x2 = jnp.dot(x1.astype(cd), w2_ref[...].astype(cd),
                 preferred_element_type=jnp.float32)
    x2 = jnp.maximum(x2 + b2_ref[...], 0.0)          # ReLU (Dropout == id)

    # Layer 3 (lane-dense padded output)
    x3 = jnp.dot(x2.astype(cd), w3_ref[...].astype(cd),
                 preferred_element_type=jnp.float32)
    o_ref[...] = (x3 + b3_ref[...]).astype(o_ref.dtype)


# ----------------------------------------------------------------------------
# POSDecoder wrapper
# ----------------------------------------------------------------------------
class POSDecoder:
    def __init__(self, input_size, hidden_size, n_class, skip_connection,
                 drop_out=0.0, key=None, tile_m=256,
                 compute_dtype=jnp.float32):
        if key is None:
            key = jax.random.PRNGKey(0)
        self.skip_connection = bool(skip_connection)
        self.n_class = int(n_class)
        self.hidden_size = int(hidden_size)
        self.input_size = int(input_size)
        self.tile_m = int(tile_m)
        self.compute_dtype = compute_dtype

        k1, k2, k3, k4, k5, k6 = jax.random.split(key, 6)

        def linear_init(kw, kb, fan_in, fan_out):
            # torch.nn.Linear default: U(-1/sqrt(fan_in), 1/sqrt(fan_in))
            bound = float(1.0 / (fan_in ** 0.5))
            w = jax.random.uniform(kw, (fan_in, fan_out), jnp.float32,
                                   -bound, bound)       # stored as [in, out]
            b = jax.random.uniform(kb, (1, fan_out), jnp.float32,
                                   -bound, bound)
            return w, b

        self.w1, self.b1 = linear_init(k1, k2, input_size, hidden_size)
        self.w2, self.b2 = linear_init(k3, k4, hidden_size, hidden_size)
        w3, b3 = linear_init(k5, k6, hidden_size, n_class)

        # Lane-dense output: zero-pad the class dim up to a multiple of 128.
        self.c_pad = max(LANE, _round_up(n_class, LANE))
        self.w3 = jnp.zeros((hidden_size, self.c_pad), jnp.float32
                            ).at[:, :n_class].set(w3)
        self.b3 = jnp.zeros((1, self.c_pad), jnp.float32
                            ).at[:, :n_class].set(b3)

    def __call__(self, z, index, batch_):
        encoded = batch_['encoded']
        m = int(index.shape[0])
        dz = int(z.shape[1])
        dx = int(encoded.shape[1]) if self.skip_connection else 0
        c_pad = self.c_pad

        # Row-tile size: clamp to the (padded) problem size for small M.
        tile_m = min(self.tile_m, _round_up(m, SUBLANE))
        m_pad = _round_up(m, tile_m)
        num_tiles = m_pad // tile_m

        idx = jnp.asarray(index, jnp.int32)
        if m_pad != m:
            idx = jnp.pad(idx, (0, m_pad - m))   # padded rows gather row 0

        def const_spec(shape):
            nd = len(shape)
            return pl.BlockSpec(shape, lambda i, idx_ref, _nd=nd: (0,) * _nd)

        if self.skip_connection:
            inputs = (z, encoded, self.w1, self.b1, self.w2, self.b2,
                      self.w3, self.b3)
            scratch = [pltpu.VMEM((tile_m, dz), jnp.float32),
                       pltpu.VMEM((tile_m, dx), jnp.float32)]
        else:
            inputs = (z, self.w1, self.b1, self.w2, self.b2,
                      self.w3, self.b3)
            scratch = [pltpu.VMEM((tile_m, dz), jnp.float32)]

        in_specs = [const_spec(a.shape) for a in inputs]
        out_spec = pl.BlockSpec((tile_m, c_pad), lambda i, idx_ref: (i, 0))

        kernel = functools.partial(
            _pos_decoder_kernel,
            skip=self.skip_connection, dz=dz, dx=dx,
            tile_m=tile_m, compute_dtype=self.compute_dtype)

        h = self.hidden_size
        flops = 2 * m_pad * ((dz + dx) * h + h * h + h * c_pad)
        bytes_accessed = int(sum(a.size * a.dtype.itemsize for a in inputs)
                             + idx.size * 4 + m_pad * c_pad * 4)

        out = pl.pallas_call(
            kernel,
            out_shape=jax.ShapeDtypeStruct((m_pad, c_pad), jnp.float32),
            grid_spec=pltpu.PrefetchScalarGridSpec(
                num_scalar_prefetch=1,
                grid=(num_tiles,),
                in_specs=in_specs,
                out_specs=out_spec,
                scratch_shapes=scratch),
            compiler_params=pltpu.CompilerParams(
                dimension_semantics=("parallel",)),
            cost_estimate=pl.CostEstimate(
                flops=int(flops), transcendentals=0,
                bytes_accessed=bytes_accessed),
        )(idx, *inputs)

        return out[:m, :self.n_class]


# ----------------------------------------------------------------------------
# Pure-JAX reference for sanity checks
# ----------------------------------------------------------------------------
def reference_forward(dec, z, index, batch_):
    h = z[index, :]
    x = batch_['encoded'][index, :]
    if dec.skip_connection:
        h = jnp.concatenate((h, x), axis=1)
    x1 = jnp.maximum(h @ dec.w1 + dec.b1, 0.0)
    x2 = jnp.maximum(x1 @ dec.w2 + dec.b2, 0.0)
    return x2 @ dec.w3[:, :dec.n_class] + dec.b3[:, :dec.n_class]


if __name__ == "__main__":
    key = jax.random.PRNGKey(0)
    kz, ke, kp, kp2 = jax.random.split(key, 4)

    # Small shapes consistent with the forward pass.
    n_rows = 16          # rows in z / batch_['encoded']
    z_dim = 16
    enc_dim = 16
    hidden_size = 32
    n_class = 8

    z = jax.random.normal(kz, (n_rows, z_dim), jnp.float32)
    encoded = jax.random.normal(ke, (n_rows, enc_dim), jnp.float32)
    batch_ = {'encoded': encoded}
    index = jnp.array([0, 3, 5, 7, 8, 10, 12, 15], dtype=jnp.int32)  # M = 8

    # skip_connection=True, f32 compute (bitwise-close to reference).
    dec = POSDecoder(z_dim + enc_dim, hidden_size, n_class,
                     skip_connection=True, drop_out=0.0, key=kp)
    out = jax.block_until_ready(dec(z, index, batch_))
    ref = reference_forward(dec, z, index, batch_)
    assert out.shape == (index.shape[0], n_class)
    assert jnp.allclose(out, ref, atol=1e-5, rtol=1e-5)

    # bf16 MXU operands with f32 accumulation (v6e/v7x fast path).
    dec_bf16 = POSDecoder(z_dim + enc_dim, hidden_size, n_class,
                          skip_connection=True, drop_out=0.0, key=kp,
                          compute_dtype=jnp.bfloat16)
    out_bf16 = jax.block_until_ready(dec_bf16(z, index, batch_))
    assert out_bf16.shape == (index.shape[0], n_class)
    assert jnp.allclose(out_bf16, ref, atol=1e-1, rtol=1e-1)

    # skip_connection=False branch.
    dec_ns = POSDecoder(z_dim, hidden_size, n_class,
                        skip_connection=False, drop_out=0.0, key=kp2)
    out_ns = jax.block_until_ready(dec_ns(z, index, batch_))
    ref_ns = reference_forward(dec_ns, z, index, batch_)
    assert jnp.allclose(out_ns, ref_ns, atol=1e-5, rtol=1e-5)

    print("KERNEL_OK")
</pallas_src>

<mosaic_0001>
module attributes {stable_mosaic.version = 11 : i64} {
  func.func @_pos_decoder_kernel(%arg0: i32, %arg1: memref<8xi32, #tpu.memory_space<smem>>, %arg2: memref<16x16xf32, #tpu.memory_space<vmem>>, %arg3: memref<16x16xf32, #tpu.memory_space<vmem>>, %arg4: memref<32x32xf32, #tpu.memory_space<vmem>>, %arg5: memref<1x32xf32, #tpu.memory_space<vmem>>, %arg6: memref<32x32xf32, #tpu.memory_space<vmem>>, %arg7: memref<1x32xf32, #tpu.memory_space<vmem>>, %arg8: memref<32x128xf32, #tpu.memory_space<vmem>>, %arg9: memref<1x128xf32, #tpu.memory_space<vmem>>, %arg10: memref<8x128xf32, #tpu.memory_space<vmem>>, %arg11: memref<8x16xf32, #tpu.memory_space<vmem>>, %arg12: memref<8x16xf32, #tpu.memory_space<vmem>>) attributes {dimension_semantics = [#tpu.dimension_semantics<parallel>], iteration_bounds = array<i64: 1>, scalar_prefetch = 1 : i64, scratch_operands = 2 : i64, tpu.core_type = #tpu.core_type<tc>, window_params = [{pipeline_mode = #tpu.pipeline_mode<synchronous>, transform_indices = @transform_0, window_bounds = array<i64: 16, 16>}, {pipeline_mode = #tpu.pipeline_mode<synchronous>, transform_indices = @transform_1, window_bounds = array<i64: 16, 16>}, {pipeline_mode = #tpu.pipeline_mode<synchronous>, transform_indices = @transform_2, window_bounds = array<i64: 32, 32>}, {pipeline_mode = #tpu.pipeline_mode<synchronous>, transform_indices = @transform_3, window_bounds = array<i64: 1, 32>}, {pipeline_mode = #tpu.pipeline_mode<synchronous>, transform_indices = @transform_4, window_bounds = array<i64: 32, 32>}, {pipeline_mode = #tpu.pipeline_mode<synchronous>, transform_indices = @transform_5, window_bounds = array<i64: 1, 32>}, {pipeline_mode = #tpu.pipeline_mode<synchronous>, transform_indices = @transform_6, window_bounds = array<i64: 32, 128>}, {pipeline_mode = #tpu.pipeline_mode<synchronous>, transform_indices = @transform_7, window_bounds = array<i64: 1, 128>}, {transform_indices = @transform_8, window_bounds = array<i64: 8, 128>}]} {
    %c8_i32 = arith.constant 8 : i32
    %0 = arith.muli %arg0, %c8_i32 : i32
    %c0_i32 = arith.constant 0 : i32
    %c8_i32_0 = arith.constant 8 : i32
    %1 = arith.addi %c0_i32, %c8_i32_0 : i32
    %c1_i32 = arith.constant 1 : i32
    scf.for %arg13 = %c0_i32 to %1 step %c1_i32  : i32 {
      %c1_i32_25 = arith.constant 1 : i32
      %27 = arith.muli %arg13, %c1_i32_25 : i32
      %c0_i32_26 = arith.constant 0 : i32
      %28 = arith.addi %c0_i32_26, %27 : i32
      %29 = arith.addi %0, %28 : i32
      %30 = arith.index_cast %29 : i32 to index
      %31 = memref.load %arg1[%30] : memref<8xi32, #tpu.memory_space<smem>>
      %32 = arith.index_cast %31 : i32 to index
      %c0_27 = arith.constant 0 : index
      %33 = vector.load %arg2[%32, %c0_27] : memref<16x16xf32, #tpu.memory_space<vmem>>, vector<1x16xf32>
      %34 = arith.index_cast %28 : i32 to index
      %c0_28 = arith.constant 0 : index
      %35 = vector.load %arg11[%34, %c0_28] : memref<8x16xf32, #tpu.memory_space<vmem>>, vector<1x16xf32>
      tpu.vector_store %arg11[%34, %c0_28], %33 {strides = array<i32>} : memref<8x16xf32, #tpu.memory_space<vmem>>, vector<1x16xf32>,
      %36 = arith.index_cast %31 : i32 to index
      %c0_29 = arith.constant 0 : index
      %37 = vector.load %arg3[%36, %c0_29] : memref<16x16xf32, #tpu.memory_space<vmem>>, vector<1x16xf32>
      %38 = arith.index_cast %28 : i32 to index
      %c0_30 = arith.constant 0 : index
      %39 = vector.load %arg12[%38, %c0_30] : memref<8x16xf32, #tpu.memory_space<vmem>>, vector<1x16xf32>
      tpu.vector_store %arg12[%38, %c0_30], %37 {strides = array<i32>} : memref<8x16xf32, #tpu.memory_space<vmem>>, vector<1x16xf32>,
    }
    %c8_i32_1 = arith.constant 8 : i32
    %c0 = arith.constant 0 : index
    %c0_2 = arith.constant 0 : index
    %2 = vector.load %arg11[%c0, %c0_2] : memref<8x16xf32, #tpu.memory_space<vmem>>, vector<8x16xf32>
    %c0_3 = arith.constant 0 : index
    %c0_4 = arith.constant 0 : index
    %3 = vector.load %arg4[%c0_3, %c0_4] : memref<32x32xf32, #tpu.memory_space<vmem>>, vector<16x32xf32>
    %cst = arith.constant dense<0.000000e+00> : vector<8x32xf32>
    %4 = tpu.matmul %2, %3, %cst {dimension_numbers = #tpu.dot_dimension_numbers<[1], [0], [0], [1], [0, 0, 1, 1], [], []>} : vector<8x16xf32>, vector<16x32xf32>, vector<8x32xf32> -> vector<8x32xf32>
    %c0_5 = arith.constant 0 : index
    %c0_6 = arith.constant 0 : index
    %5 = vector.load %arg12[%c0_5, %c0_6] : memref<8x16xf32, #tpu.memory_space<vmem>>, vector<8x16xf32>
    %c16 = arith.constant 16 : index
    %c0_7 = arith.constant 0 : index
    %6 = vector.load %arg4[%c16, %c0_7] : memref<32x32xf32, #tpu.memory_space<vmem>>, vector<16x32xf32>
    %cst_8 = arith.constant dense<0.000000e+00> : vector<8x32xf32>
    %7 = tpu.matmul %5, %6, %cst_8 {dimension_numbers = #tpu.dot_dimension_numbers<[1], [0], [0], [1], [0, 0, 1, 1], [], []>} : vector<8x16xf32>, vector<16x32xf32>, vector<8x32xf32> -> vector<8x32xf32>
    %8 = arith.addf %4, %7 : vector<8x32xf32>
    %c0_9 = arith.constant 0 : index
    %c0_10 = arith.constant 0 : index
    %9 = vector.load %arg5[%c0_9, %c0_10] : memref<1x32xf32, #tpu.memory_space<vmem>>, vector<1x32xf32>
    %10 = vector.broadcast %9 : vector<1x32xf32> to vector<8x32xf32>
    %11 = arith.addf %8, %10 : vector<8x32xf32>
    %cst_11 = arith.constant 0.000000e+00 : f32
    %12 = vector.broadcast %cst_11 : f32 to vector<8x32xf32>
    %13 = arith.maximumf %11, %12 : vector<8x32xf32>
    %c0_12 = arith.constant 0 : index
    %c0_13 = arith.constant 0 : index
    %14 = vector.load %arg6[%c0_12, %c0_13] : memref<32x32xf32, #tpu.memory_space<vmem>>, vector<32x32xf32>
    %cst_14 = arith.constant dense<0.000000e+00> : vector<8x32xf32>
    %15 = tpu.matmul %13, %14, %cst_14 {dimension_numbers = #tpu.dot_dimension_numbers<[1], [0], [0], [1], [0, 0, 1, 1], [], []>} : vector<8x32xf32>, vector<32x32xf32>, vector<8x32xf32> -> vector<8x32xf32>
    %c0_15 = arith.constant 0 : index
    %c0_16 = arith.constant 0 : index
    %16 = vector.load %arg7[%c0_15, %c0_16] : memref<1x32xf32, #tpu.memory_space<vmem>>, vector<1x32xf32>
    %17 = vector.broadcast %16 : vector<1x32xf32> to vector<8x32xf32>
    %18 = arith.addf %15, %17 : vector<8x32xf32>
    %cst_17 = arith.constant 0.000000e+00 : f32
    %19 = vector.broadcast %cst_17 : f32 to vector<8x32xf32>
    %20 = arith.maximumf %18, %19 : vector<8x32xf32>
    %c0_18 = arith.constant 0 : index
    %c0_19 = arith.constant 0 : index
    %21 = vector.load %arg8[%c0_18, %c0_19] : memref<32x128xf32, #tpu.memory_space<vmem>>, vector<32x128xf32>
    %cst_20 = arith.constant dense<0.000000e+00> : vector<8x128xf32>
    %22 = tpu.matmul %20, %21, %cst_20 {dimension_numbers = #tpu.dot_dimension_numbers<[1], [0], [0], [1], [0, 0, 1, 1], [], []>} : vector<8x32xf32>, vector<32x128xf32>, vector<8x128xf32> -> vector<8x128xf32>
    %c0_21 = arith.constant 0 : index
    %c0_22 = arith.constant 0 : index
    %23 = vector.load %arg9[%c0_21, %c0_22] : memref<1x128xf32, #tpu.memory_space<vmem>>, vector<1x128xf32>
    %24 = vector.broadcast %23 : vector<1x128xf32> to vector<8x128xf32>
    %25 = arith.addf %22, %24 : vector<8x128xf32>
    %c0_23 = arith.constant 0 : index
    %c0_24 = arith.constant 0 : index
    %26 = vector.load %arg10[%c0_23, %c0_24] : memref<8x128xf32, #tpu.memory_space<vmem>>, vector<8x128xf32>
    tpu.vector_store %arg10[%c0_23, %c0_24], %25 {strides = array<i32>} : memref<8x128xf32, #tpu.memory_space<vmem>>, vector<8x128xf32>,
    return
  }
  func.func @transform_0(%arg0: i32, %arg1: memref<8xi32, #tpu.memory_space<smem>>) -> (i32, i32) {
    %c0_i32 = arith.constant 0 : i32
    %c0_i32_0 = arith.constant 0 : i32
    %c0_i32_1 = arith.constant 0 : i32
    return %c0_i32, %c0_i32_0 : i32, i32
  }
  func.func @transform_1(%arg0: i32, %arg1: memref<8xi32, #tpu.memory_space<smem>>) -> (i32, i32) {
    %c0_i32 = arith.constant 0 : i32
    %c0_i32_0 = arith.constant 0 : i32
    %c0_i32_1 = arith.constant 0 : i32
    return %c0_i32, %c0_i32_0 : i32, i32
  }
  func.func @transform_2(%arg0: i32, %arg1: memref<8xi32, #tpu.memory_space<smem>>) -> (i32, i32) {
    %c0_i32 = arith.constant 0 : i32
    %c0_i32_0 = arith.constant 0 : i32
    %c0_i32_1 = arith.constant 0 : i32
    return %c0_i32, %c0_i32_0 : i32, i32
  }
  func.func @transform_3(%arg0: i32, %arg1: memref<8xi32, #tpu.memory_space<smem>>) -> (i32, i32) {
    %c0_i32 = arith.constant 0 : i32
    %c0_i32_0 = arith.constant 0 : i32
    %c0_i32_1 = arith.constant 0 : i32
    return %c0_i32, %c0_i32_0 : i32, i32
  }
  func.func @transform_4(%arg0: i32, %arg1: memref<8xi32, #tpu.memory_space<smem>>) -> (i32, i32) {
    %c0_i32 = arith.constant 0 : i32
    %c0_i32_0 = arith.constant 0 : i32
    %c0_i32_1 = arith.constant 0 : i32
    return %c0_i32, %c0_i32_0 : i32, i32
  }
  func.func @transform_5(%arg0: i32, %arg1: memref<8xi32, #tpu.memory_space<smem>>) -> (i32, i32) {
    %c0_i32 = arith.constant 0 : i32
    %c0_i32_0 = arith.constant 0 : i32
    %c0_i32_1 = arith.constant 0 : i32
    return %c0_i32, %c0_i32_0 : i32, i32
  }
  func.func @transform_6(%arg0: i32, %arg1: memref<8xi32, #tpu.memory_space<smem>>) -> (i32, i32) {
    %c0_i32 = arith.constant 0 : i32
    %c0_i32_0 = arith.constant 0 : i32
    %c0_i32_1 = arith.constant 0 : i32
    return %c0_i32, %c0_i32_0 : i32, i32
  }
  func.func @transform_7(%arg0: i32, %arg1: memref<8xi32, #tpu.memory_space<smem>>) -> (i32, i32) {
    %c0_i32 = arith.constant 0 : i32
    %c0_i32_0 = arith.constant 0 : i32
    %c0_i32_1 = arith.constant 0 : i32
    return %c0_i32, %c0_i32_0 : i32, i32
  }
  func.func @transform_8(%arg0: i32, %arg1: memref<8xi32, #tpu.memory_space<smem>>) -> (i32, i32) {
    %c0_i32 = arith.constant 0 : i32
    %c0_i32_0 = arith.constant 0 : i32
    return %arg0, %c0_i32 : i32, i32
  }
}

</mosaic_0001>

<bundles_post_ra>
// kernel: tpu_custom_call.1
= control target key start
LH: loop header
LB: loop body
LE: loop exit
PB: predicated region body
PF: predicated region fallthrough
CT: control target
= control target key end

     0   :  { %s921_s0 = inlined_call_operand.hbm [shape: s32[8], index: 0, kind: input, shape index: {}]   ;;  %s922_s1 = inlined_call_operand.hbm [shape: f32[16,16], index: 1, kind: input, shape index: {}]   ;;  %s923_s2 = inlined_call_operand.hbm [shape: f32[16,16], index: 2, kind: input, shape index: {}]   ;;  %s924_s3 = inlined_call_operand.hbm [shape: f32[32,32], index: 3, kind: input, shape index: {}]   ;;  %s925_s4 = inlined_call_operand.vmem [shape: f32[1,32], index: 4, kind: input, shape index: {}]   ;;  %s926_s5 = inlined_call_operand.hbm [shape: f32[32,32], index: 5, kind: input, shape index: {}]   ;;  %s927_s6 = inlined_call_operand.vmem [shape: f32[1,32], index: 6, kind: input, shape index: {}]   ;;  %s928_s7 = inlined_call_operand.hbm [shape: f32[32,128], index: 7, kind: input, shape index: {}]   ;;  %s929_s8 = inlined_call_operand.vmem [shape: f32[1,128], index: 8, kind: input, shape index: {}]   ;;  %s930_s9 = inlined_call_operand.hbm [shape: f32[8,128], index: 9, kind: output, shape index: {}]  }
   0x1   :  { %s577_s11 = scalar_lea.hbm %s921_s0, 16 }
   0x2   :  { %p578_p0 = scmp.ne.s32.totalorder %s921_s0, %s577_s11  ;;  %p581_p1 = scmp.lt.u32.totalorder %s577_s11, %s921_s0 }
   0x4   :  { %p583_p2 = pnand %p581_p1, %p578_p0 }
   0x6   :  { %586 = shalt.err (!%p583_p2)  }
   0x7   :  { %s737_s16 = smov [#allocation5]  }
   0x8   :  { %15 = dma.hbm_to_smem %s921_s0, 16, %s737_s16, [#allocation4] }
   0x9   :  { %723 = dma.done.wait [#allocation4], 16 }
   0xa   :  { %724 = vsyncadd [#allocation4], 4294967280 }
   0xb   :  { %17 = sfence }
   0xc   :  { %18 = vsyncpa [#allocation7], 0 }
   0xd   :  { %19 = vsyncpa [#allocation10], 0 }
   0xe   :  { %20 = vsyncpa [#allocation13], 0 }
   0xf   :  { %21 = vsyncpa [#allocation8], 0  ;;  %s738_s19 = smov [#allocation9]   ;;  %s739_s21 = smov [#allocation12]  }
  0x10   :  { %s39_s20 = sshll.u32 %s738_s19, 4  ;;  %s65_s22 = sshll.u32 %s739_s21, 4  ;;  %s40_s20 = int_to_ptr.vmem [resolvable:$true] %s39_s20  ;;  %s811_s22 = int_to_ptr.vmem [resolvable:$true] %s65_s22 }
  0x11   :  { %s587_s25 = scalar_lea.hbm %s923_s2, 256 }
  0x12   :  { %p588_p3 = scmp.ne.s32.totalorder %s923_s2, %s587_s25  ;;  %p591_p4 = scmp.lt.u32.totalorder %s587_s25, %s923_s2 }
  0x14   :  { %p593_p5 = pnand %p591_p4, %p588_p3 }
  0x16   :  { %596 = shalt.err (!%p593_p5)
}
  0x17   :  { %s597_s29 = scalar_lea.vmem %s40_s20, 256  ;;  %p602_p7 = scmp.lt.s32.totalorder %s40_s20, %s40_s20 }
  0x18   :  { %p598_p6 = scmp.ne.s32.totalorder %s40_s20, %s597_s29  ;;  %p603_p8 = scmp.lt.s32.totalorder %s597_s29, %s597_s29 }
  0x1a   :  { %p604_p9 = por %p603_p8, %p602_p7 }
  0x1c   :  { %p605_p10 = pnand %p604_p9, %p598_p6 }
  0x1e   :  { %608 = shalt.err (!%p605_p10)
}
  0x1f   :  { %s740_s30 = smov 128   ;;  %s741_s10 = smov 8  }
  0x20   :  { %45 = dma.hbm_to_vmem [thread:$0]  %s923_s2, 256, %s40_s20, [#allocation10], %s740_s30, %s740_s30, %s741_s10  }
  0x21   :  { %s609_s15 = scalar_lea.hbm %s926_s5, 512 }
  0x22   :  { %p610_p11 = scmp.ne.s32.totalorder %s926_s5, %s609_s15  ;;  %p613_p12 = scmp.lt.u32.totalorder %s609_s15, %s926_s5 }
  0x24   :  { %p615_p13 = pnand %p613_p12, %p610_p11 }
  0x26   :  { %618 = shalt.err (!%p615_p13)
}
  0x27   :  { %s619_s21 = scalar_lea.vmem %s811_s22, 512  ;;  %p624_p1 = scmp.lt.s32.totalorder %s811_s22, %s811_s22 }
  0x28   :  { %p620_p0 = scmp.ne.s32.totalorder %s811_s22, %s619_s21  ;;  %p625_p2 = scmp.lt.s32.totalorder %s619_s21, %s619_s21 }
  0x2a   :  { %p626_p3 = por %p625_p2, %p624_p1 }
  0x2c   :  { %p627_p4 = pnand %p626_p3, %p620_p0 }
  0x2e   :  { %630 = shalt.err (!%p627_p4)
}
  0x2f   :  { %71 = dma.hbm_to_vmem [thread:$0]  %s926_s5, 512, %s811_s22, [#allocation13], %s740_s30, %s740_s30, %s741_s10  }
  0x30   :  { %s742_s23 = smov [#allocation6]   ;;  %s743_s25 = smov [#allocation11]  }
  0x31   :  { %s27_s24 = sshll.u32 %s742_s23, 4  ;;  %s51_s26 = sshll.u32 %s743_s25, 4  ;;  %s28_s24 = int_to_ptr.vmem [resolvable:$true] %s27_s24  ;;  %s848_s26 = int_to_ptr.vmem [resolvable:$true] %s51_s26 }
  0x32   :  { %s631_s28 = scalar_lea.hbm %s922_s1, 256 }
  0x33   :  { %p632_p5 = scmp.ne.s32.totalorder %s922_s1, %s631_s28  ;;  %p635_p6 = scmp.lt.u32.totalorder %s631_s28, %s922_s1 }
  0x35   :  { %p637_p7 = pnand %p635_p6, %p632_p5 }
  0x37   :  { %640 = shalt.err (!%p637_p7)
}
  0x38   :  { %s641_s5 = scalar_lea.vmem %s28_s24, 256  ;;  %p646_p9 = scmp.lt.s32.totalorder %s28_s24, %s28_s24 }
  0x39   :  { %p642_p8 = scmp.ne.s32.totalorder %s28_s24, %s641_s5  ;;  %p647_p10 = scmp.lt.s32.totalorder %s641_s5, %s641_s5 }
  0x3b   :  { %p648_p11 = por %p647_p10, %p646_p9 }
  0x3d   :  { %p649_p12 = pnand %p648_p11, %p642_p8 }
  0x3f   :  { %652 = shalt.err (!%p649_p12)
}
  0x40   :  { %33 = dma.hbm_to_vmem [thread:$0]  %s922_s1, 256, %s28_s24, [#allocation7], %s740_s30, %s740_s30, %s741_s10  }
  0x41   :  { %s653_s17 = scalar_lea.hbm %s924_s3, 512 }
  0x42   :  { %p654_p13 = scmp.ne.s32.totalorder %s924_s3, %s653_s17  ;;  %p657_p0 = scmp.lt.u32.totalorder %s653_s17, %s924_s3 }
  0x44   :  { %p659_p1 = pnand %p657_p0, %p654_p13 }
  0x46   :  { %662 = shalt.err (!%p659_p1)
}
  0x47   :  { %s663_s20 = scalar_lea.vmem %s848_s26, 512  ;;  %p668_p3 = scmp.lt.s32.totalorder %s848_s26, %s848_s26 }
  0x48   :  { %p664_p2 = scmp.ne.s32.totalorder %s848_s26, %s663_s20  ;;  %p669_p4 = scmp.lt.s32.totalorder %s663_s20, %s663_s20 }
  0x4a   :  { %p670_p5 = por %p669_p4, %p668_p3 }
  0x4c   :  { %p671_p6 = pnand %p670_p5, %p664_p2 }
  0x4e   :  { %674 = shalt.err (!%p671_p6)
}
  0x4f   :  { %57 = dma.hbm_to_vmem [thread:$0]  %s924_s3, 512, %s848_s26, [#allocation10], %s740_s30, %s740_s30, %s741_s10  }
  0x50   :  { %s744_s24 = smov [#allocation14]   ;;  %s675_s28 = scalar_lea.hbm %s928_s7, 512 }
  0x51   :  { %s79_s25 = sshll.u32 %s744_s24, 4  ;;  %p676_p7 = scmp.ne.s32.totalorder %s928_s7, %s675_s28  ;;  %s80_s25 = int_to_ptr.vmem [resolvable:$true] %s79_s25 }
  0x52   :  { %p679_p8 = scmp.lt.u32.totalorder %s675_s28, %s928_s7 }
  0x54   :  { %p681_p9 = pnand %p679_p8, %p676_p7 }
  0x56   :  { %684 = shalt.err (!%p681_p9)
}
  0x57   :  { %s685_s5 = scalar_lea.vmem %s80_s25, 512  ;;  %p690_p11 = scmp.lt.s32.totalorder %s80_s25, %s80_s25 }
  0x58   :  { %p686_p10 = scmp.ne.s32.totalorder %s80_s25, %s685_s5  ;;  %p691_p12 = scmp.lt.s32.totalorder %s685_s5, %s685_s5 }
  0x5a   :  { %p692_p13 = por %p691_p12, %p690_p11 }
  0x5c   :  { %p693_p0 = pnand %p692_p13, %p686_p10 }
  0x5e   :  { %696 = shalt.err (!%p693_p0)
}
  0x5f   :  { %85 = dma.hbm_to_vmem [thread:$0]  %s928_s7, 512, %s80_s25, [#allocation13], %s740_s30, %s740_s30, %s741_s10  }
  0x60   :  { %725 = dma.done.wait [#allocation7], 256  }
  0x61   :  { %726 = vsyncadd [#allocation7], 4294967040 }
  0x62   :  { %727 = dma.done.wait [#allocation10], 768  }
  0x63   :  { %728 = vsyncadd [#allocation10], 4294966528 }
  0x64   :  { %729 = dma.done.wait [#allocation13], 1024  }
  0x65   :  { %730 = vsyncadd [#allocation13], 4294966272  ;;  %s733_s22 = smov 0  }
  0x66 LB: > { %s111_s14 = sld [smem:[#allocation5 + %s735_s22]]  ;;  %vm115_vm0 = vcmask 122880   ;;  %s114_s17 = scalar_lea.vmem [#allocation2], %s735_s22  ;;  %s735_s22 = sphi %s733_s22, %s109_s22  }
  0x67   : > { %s119_s18 = scalar_lea.vmem [#allocation3], %s735_s22  ;;  %s109_s22 = sadd.s32 1, %s735_s22  }
  0x68   : > { %p106_p1 = scmp.ge.s32.totalorder %s109_s22, 8  }
  0x69   :  { %v125_v2 = vld [vmem:[#allocation11 + $0x10] sm:$0xff] (%p106_p1)  ;;  %v126_v3 = vld [vmem:[#allocation11 + $0x18] sm:$0xff] (%p106_p1)  ;;  %v122_v4 = vld [vmem:[#allocation11] sm:$0xff] (%p106_p1)  ;;  %v745_v5 = vmov (%p106_p1), 0.0|0.0   ;;  %vm746_vm1 = vmmov (%p106_p1), 0   ;;  %v747_v9 = vmov (%p106_p1), 0.0  }
  0x6a   :  { %108 = sbr.rel (!%p106_p1) target bundleno = 102 (0x66), region = 83  ;;  %539 = vmatprep.subr.bf16.mxu0 (%p106_p1), %v745_v5  ;;  %542 = vmatprep.subr.bf16.mxu1 (%p106_p1), %v745_v5  ;;  %v540_v6 = vpack.c.bf16 (%p106_p1), %v126_v3, %v125_v2  ;;  %v123_v7 = vld [vmem:[#allocation11 + $0x8] sm:$0xff] (%p106_p1)  ;;  %vm127_vm2 = vcmask (%p106_p1), 130048   ;;  %v283_v12 = vld [vmem:[#allocation12] sm:$0xff] (%p106_p1)  ;;  %v285_v15 = vld [vmem:[#allocation12 + $0x10] sm:$0xff] (%p106_p1)  ;;  %vm294_vm3 = vcmask (%p106_p1), 261120  }
  0x6b   :  { %v543_v8 = vpack.c.bf16 (%p106_p1), %v123_v7, %v122_v4  ;;  %507 = vmatprep.mubr.msk.f32.mxu0 (%p106_p1), %vm746_vm1, %v747_v9  ;;  %514 = vmatprep.mubr.msk.f32.mxu1 (%p106_p1), %vm746_vm1, %v747_v9  ;;  %v284_v13 = vld [vmem:[#allocation12 + $0x8] sm:$0xff] (%p106_p1)  ;;  %v286_v16 = vld [vmem:[#allocation12 + $0x18] sm:$0xff] (%p106_p1)  ;;  %v369_v18 = vld [vmem:[#allocation14] sm:$0xff] (%p106_p1)  ;;  %s748_s2 = smov (%p106_p1), [#allocation15]  }
  0x6c   : > { %s112_s15 = scalar_lea.vmem [#allocation6], %s111_s14  ;;  %s117_s16 = scalar_lea.vmem [#allocation9], %s111_s14  ;;  %541 = vmatpush3.bf16.msra.mxu0 (%p106_p1), %v540_v6  ;;  %v546_v14 = vpack.c.bf16 (%p106_p1), %v284_v13, %v283_v12  ;;  %v549_v17 = vpack.c.bf16 (%p106_p1), %v286_v16, %v285_v15  ;;  %v370_v19 = vld [vmem:[#allocation14 + $0x8] sm:$0xff] (%p106_p1)  ;;  %v482_v23 = vld [vmem:[%s925_s4] ss:$0 sm:$0xff] (%p106_p1)  ;;  %v372_v30 = vld [vmem:[#allocation14 + $0x18] sm:$0xff] (%p106_p1) }
  0x6d   : > { %v113_v0 = vld [vmem:[%s112_s15] sm:$0x1]  ;;  %544 = vmatpush3.bf16.msra.mxu1 (%p106_p1), %v543_v8  ;;  %545 = vmatprep.subr.bf16.mxu0 (%p106_p1), %v745_v5  ;;  %v552_v20 = vpack.c.bf16 (%p106_p1), %v370_v19, %v369_v18  ;;  %s460_s20 = sshll.u32 (%p106_p1), %s748_s2, 4  ;;  %s461_s20 = int_to_ptr.vmem [resolvable:$true] %s460_s20 }
  0x6e   : > { %v118_v1 = vld [vmem:[%s117_s16] sm:$0x1]  ;;  %116 = vst.msk [vmem:[%s114_s17] sm:$0x1] %vm115_vm0, %v113_v0  ;;  %551 = vmatprep.subr.bf16.mxu1 (%p106_p1), %v745_v5  ;;  %s697_s1 = scalar_lea.vmem (%p106_p1), %s461_s20, 128  ;;  %p702_p3 = scmp.lt.s32.totalorder (%p106_p1), %s461_s20, %s461_s20 }
  0x6f   : > { %120 = vst.msk [vmem:[%s119_s18] sm:$0x1] %vm115_vm0, %v118_v1  ;;  %v371_v29 = vld [vmem:[#allocation14 + $0x10] sm:$0xff] (%p106_p1)  ;;  %p698_p2 = scmp.ne.s32.totalorder (%p106_p1), %s461_s20, %s697_s1  ;;  %p703_p4 = scmp.lt.s32.totalorder (%p106_p1), %s697_s1, %s697_s1 }
  0x70   :  { %v555_v31 = vpack.c.bf16 (%p106_p1), %v372_v30, %v371_v29  ;;  %v483_v32 = vld [vmem:[%s927_s6] ss:$0 sm:$0xff] (%p106_p1) }
  0x71   :  { %v485_v37 = vld [vmem:[%s929_s8] ss:$0 sm:$0xff]  ;;  %p704_p5 = por %p703_p4, %p702_p3 }
  0x73   :  { %p705_p6 = pnand %p704_p5, %p698_p2 }
  0x75   :  { %v121_v11 = vld [vmem:[#allocation2] sm:$0xff] }
  0x76   :  { %v124_v10 = vld [vmem:[#allocation3] sm:$0xff]  ;;  %515 = vmatmul.mubr.msk.f32.vlgmr.msra.gmra.mrb[0].mxu1 %vm127_vm2, %v121_v11 }
  0x77   :  { %508 = vmatmul.mubr.msk.f32.vlgmr.msra.gmra.mrb[0].mxu0 %vm127_vm2, %v124_v10  ;;  %536 = vmatprep.mubr.msk.f32.mxu1 %vm746_vm1, %v747_v9 }
  0x78   :  { %525 = vmatprep.mubr.msk.f32.mxu0 %vm746_vm1, %v747_v9  ;;  %547 = vmatpush3.bf16.msra.mxu0 %v546_v14 }
  0x79   :  { %548 = vmatprep.subr.bf16.mxu0 %v745_v5  ;;  %553 = vmatpush3.bf16.msra.mxu1 %v552_v20 }
  0x7a   :  { %554 = vmatprep.subr.bf16.mxu1 %v745_v5 }
  0x7c   :  { %550 = vmatpush3.bf16.msra.mxu0 %v549_v17 }
  0x7d   :  { %556 = vmatpush3.bf16.msra.mxu1 %v555_v31 }
 0x149   :  { %v270_v22 = vpop.f32.mrb[0].mxu1 }
 0x14a   :  { %v197_v21 = vpop.f32.mrb[0].mxu0  ;;  %v516_v26 = vpop.f32.mrb[1].mxu1 }
 0x14b   :  { %v509_v24 = vpop.f32.mrb[1].mxu0  ;;  %v271_v25 = vadd.f32 %v270_v22, %v197_v21 }
 0x14d   :  { %v281_v27 = vadd.f32 %v482_v23, %v271_v25 }
 0x14f   :  { %v282_v28 = vmax.f32 %v281_v27, 0.0 }
 0x151   :  { %526 = vmatmul.mubr.msk.f32.vlgmr.msra.gmra.mrb[2].mxu0 %vm294_vm3, %v282_v28 }
 0x224   :  { %v364_v33 = vpop.f32.mrb[2].mxu0 }
 0x225   :  { %v365_v34 = vadd.f32 %v483_v32, %v364_v33  ;;  %v527_v35 = vpop.f32.mrb[3].mxu0 }
 0x227   :  { %v368_v36 = vmax.f32 %v365_v34, 0.0 }
 0x229   :  { %537 = vmatmul.mubr.msk.f32.vlgmr.msra.gmra.mrb[2].mxu1 %vm294_vm3, %v368_v36 }
 0x2fc   :  { %v449_v38 = vpop.f32.mrb[2].mxu1 }
 0x2fd   :  { %v450_v39 = vadd.f32 %v485_v37, %v449_v38  ;;  %v538_v40 = vpop.f32.mrb[3].mxu1 }
 0x2ff   :  { %453 = vst [vmem:[#allocation15] sm:$0xff] %v450_v39 }
 0x300   :  { %708 = shalt.err (!%p705_p6)
}
 0x301   :  { %s709_s24 = scalar_lea.hbm %s930_s9, 128 }
 0x302   :  { %p710_p7 = scmp.ne.s32.totalorder %s930_s9, %s709_s24  ;;  %p713_p8 = scmp.lt.u32.totalorder %s709_s24, %s930_s9 }
 0x304   :  { %p715_p9 = pnand %p713_p8, %p710_p7 }
 0x306   :  { %718 = shalt.err (!%p715_p9)
}
 0x307   :  { %463 = dma.vmem_to_hbm [thread:$0]  %s461_s20, 128, %s930_s9, [#allocation8]  }
 0x308   :  { %731 = dma.done.wait [#allocation8], 128  }
 0x309   :  { %732 = vsyncadd [#allocation8], 4294967168 }
 0x30a   :  { %467 = vsyncpa [#allocation7], 1 }
 0x30b   :  { %468 = vsyncpa [#allocation10], 1 }
 0x30c   :  { %469 = vsyncpa [#allocation13], 1 }
 0x30d   :  { %470 = vsyncpa [#allocation8], 1 }

</bundles_post_ra>
